<compile_context>
chip_gen: v7x
topology: tpu7x:2x2x1
jax: 0.10.0
libtpu: 0.0.40
codegen_flags: <defaults>
</compile_context>

<pallas_src>
import functools

import jax
import jax.numpy as jnp
from jax.experimental import pallas as pl
from jax.experimental.pallas import tpu as pltpu

NEG_SLOPE = 0.01    # torch.nn.functional.leaky_relu default
LANE = 128          # TPU lane width; output slab is padded to this
NEG_BIG = -1e30     # finite "-inf" for masking padded softmax lanes


def _leaky_relu(x):
    return jnp.where(x > 0, x, NEG_SLOPE * x)


def actor_kernel(n_actions,
                 x_ref, w1_ref, b1_ref, w2_ref, b2_ref, w3_ref, b3_ref,
                 o_ref):
    x = x_ref[...]

    # layer1 + leaky_relu  (dropout = identity in eval mode)
    h1 = jnp.dot(x, w1_ref[...], preferred_element_type=jnp.float32) + b1_ref[...]
    h1 = _leaky_relu(h1)

    # layer2 + leaky_relu  (dropout = identity in eval mode)
    h2 = jnp.dot(h1, w2_ref[...], preferred_element_type=jnp.float32) + b2_ref[...]
    h2 = _leaky_relu(h2)

    # layer3 — lane-padded to LANE columns; padded lanes masked to a huge
    # negative value so they contribute exp(~-inf) == 0 to the softmax.
    logits = jnp.dot(h2, w3_ref[...], preferred_element_type=jnp.float32) + b3_ref[...]
    lane_idx = jax.lax.broadcasted_iota(jnp.int32, logits.shape, dimension=1)
    logits = jnp.where(lane_idx < n_actions, logits, NEG_BIG)

    # softmax over actions (last axis) — exact division so rows sum to 1.
    m = jnp.max(logits, axis=-1, keepdims=True)
    e = jnp.exp(logits - m)
    denom = jnp.sum(e, axis=-1, keepdims=True)
    o_ref[...] = (e / denom).astype(o_ref.dtype)


def actor_forward(x, params, *, tm=128):
    """x: [B, n_states] float32.  params: dict of pre-transposed weights/biases.

    Returns softmax probabilities of shape [B, n_actions]."""
    w1, b1, w2, b2, w3, b3 = (
        params["w1"], params["b1"], params["w2"],
        params["b2"], params["w3"], params["b3"],
    )
    B, n_states = x.shape
    hidden = w1.shape[1]
    n_actions = w3.shape[1]

    # --- lane-dense output: pad the last linear layer to a multiple of 128 ---
    n_pad = max(LANE, pl.cdiv(n_actions, LANE) * LANE)
    w3p = jnp.zeros((hidden, n_pad), w3.dtype).at[:, :n_actions].set(w3)
    b3p = jnp.zeros((1, n_pad), b3.dtype).at[:, :n_actions].set(b3)

    # --- batch tiling: pad B up to a multiple of the row tile ---
    tm = min(tm, max(8, ((B + 7) // 8) * 8))  # don't over-tile tiny batches
    b_pad = pl.cdiv(B, tm) * tm
    if b_pad != B:
        x = jnp.pad(x, ((0, b_pad - B), (0, 0)))
    grid = (b_pad // tm,)

    resident = lambda a: pl.BlockSpec(a.shape, lambda i: (0, 0))  # stays in VMEM

    out = pl.pallas_call(
        functools.partial(actor_kernel, n_actions),
        out_shape=jax.ShapeDtypeStruct((b_pad, n_pad), jnp.float32),
        grid=grid,
        in_specs=[
            pl.BlockSpec((tm, n_states), lambda i: (i, 0)),   # streamed activations
            resident(w1), resident(b1),
            resident(w2), resident(b2),
            resident(w3p), resident(b3p),
        ],
        out_specs=pl.BlockSpec((tm, n_pad), lambda i: (i, 0)),
        compiler_params=pltpu.CompilerParams(
            dimension_semantics=("parallel",)),
    )(x, w1, b1, w2, b2, w3p, b3p)

    return out[:B, :n_actions]


def init_params(key, n_states, n_actions, hidden):
    """Deterministic init mimicking torch.nn.Linear default (uniform +/- 1/sqrt(fan_in)).

    Weights are stored as [in_features, out_features] (pre-transposed for x @ W)."""
    ks = jax.random.split(key, 6)

    def linear(kw, kb, fan_in, fan_out):
        bound = 1.0 / jnp.sqrt(jnp.float32(fan_in))
        w = jax.random.uniform(kw, (fan_in, fan_out), jnp.float32, -bound, bound)
        b = jax.random.uniform(kb, (1, fan_out), jnp.float32, -bound, bound)
        return w, b

    w1, b1 = linear(ks[0], ks[1], n_states, hidden)
    w2, b2 = linear(ks[2], ks[3], hidden, hidden)
    w3, b3 = linear(ks[4], ks[5], hidden, n_actions)
    return {"w1": w1, "b1": b1, "w2": w2, "b2": b2, "w3": w3, "b3": b3}


def actor_reference(x, p):
    """Pure-JAX reference of the same forward pass (for verification)."""
    h1 = _leaky_relu(x @ p["w1"] + p["b1"])
    h2 = _leaky_relu(h1 @ p["w2"] + p["b2"])
    logits = h2 @ p["w3"] + p["b3"]
    return jax.nn.softmax(logits, axis=1)


if __name__ == "__main__":
    key = jax.random.PRNGKey(0)
    k_params, k_x = jax.random.split(key)

    # Small but MXU/grid-meaningful shapes: 2 grid steps of 128 rows each.
    batch = 256
    n_states = 32
    hidden = 128
    n_actions = 8

    params = init_params(k_params, n_states, n_actions, hidden)
    x = jax.random.normal(k_x, (batch, n_states), jnp.float32)

    out = actor_forward(x, params)
    out = jax.block_until_ready(out)

    ref = actor_reference(x, params)
    assert out.shape == (batch, n_actions)
    assert jnp.allclose(out, ref, atol=1e-3, rtol=1e-3), "mismatch vs JAX reference"
    assert jnp.allclose(jnp.sum(out, axis=1), 1.0, atol=1e-3), "softmax rows must sum to 1"

    print("KERNEL_OK")
</pallas_src>

<mosaic_0001>
module attributes {stable_mosaic.version = 11 : i64} {
  func.func @actor_kernel(%arg0: i32, %arg1: memref<128x32xf32, #tpu.memory_space<vmem>>, %arg2: memref<32x128xf32, #tpu.memory_space<vmem>>, %arg3: memref<1x128xf32, #tpu.memory_space<vmem>>, %arg4: memref<128x128xf32, #tpu.memory_space<vmem>>, %arg5: memref<1x128xf32, #tpu.memory_space<vmem>>, %arg6: memref<128x128xf32, #tpu.memory_space<vmem>>, %arg7: memref<1x128xf32, #tpu.memory_space<vmem>>, %arg8: memref<128x128xf32, #tpu.memory_space<vmem>>) attributes {dimension_semantics = [#tpu.dimension_semantics<parallel>], iteration_bounds = array<i64: 2>, scalar_prefetch = 0 : i64, scratch_operands = 0 : i64, tpu.core_type = #tpu.core_type<tc>, window_params = [{transform_indices = @transform_0, window_bounds = array<i64: 128, 32>}, {pipeline_mode = #tpu.pipeline_mode<synchronous>, transform_indices = @transform_1, window_bounds = array<i64: 32, 128>}, {pipeline_mode = #tpu.pipeline_mode<synchronous>, transform_indices = @transform_2, window_bounds = array<i64: 1, 128>}, {pipeline_mode = #tpu.pipeline_mode<synchronous>, transform_indices = @transform_3, window_bounds = array<i64: 128, 128>}, {pipeline_mode = #tpu.pipeline_mode<synchronous>, transform_indices = @transform_4, window_bounds = array<i64: 1, 128>}, {pipeline_mode = #tpu.pipeline_mode<synchronous>, transform_indices = @transform_5, window_bounds = array<i64: 128, 128>}, {pipeline_mode = #tpu.pipeline_mode<synchronous>, transform_indices = @transform_6, window_bounds = array<i64: 1, 128>}, {transform_indices = @transform_7, window_bounds = array<i64: 128, 128>}]} {
    %c0 = arith.constant 0 : index
    %c0_0 = arith.constant 0 : index
    %0 = vector.load %arg1[%c0, %c0_0] : memref<128x32xf32, #tpu.memory_space<vmem>>, vector<128x32xf32>
    %c0_1 = arith.constant 0 : index
    %c0_2 = arith.constant 0 : index
    %1 = vector.load %arg2[%c0_1, %c0_2] : memref<32x128xf32, #tpu.memory_space<vmem>>, vector<32x128xf32>
    %cst = arith.constant dense<0.000000e+00> : vector<128x128xf32>
    %2 = tpu.matmul %0, %1, %cst {dimension_numbers = #tpu.dot_dimension_numbers<[1], [0], [0], [1], [0, 0, 1, 1], [], []>} : vector<128x32xf32>, vector<32x128xf32>, vector<128x128xf32> -> vector<128x128xf32>
    %c0_3 = arith.constant 0 : index
    %c0_4 = arith.constant 0 : index
    %3 = vector.load %arg3[%c0_3, %c0_4] : memref<1x128xf32, #tpu.memory_space<vmem>>, vector<1x128xf32>
    %4 = vector.broadcast %3 : vector<1x128xf32> to vector<128x128xf32>
    %5 = arith.addf %2, %4 : vector<128x128xf32>
    %cst_5 = arith.constant 0.000000e+00 : f32
    %6 = vector.broadcast %cst_5 : f32 to vector<128x128xf32>
    %7 = arith.cmpf ogt, %5, %6 : vector<128x128xf32>
    %cst_6 = arith.constant 0.00999999977 : f32
    %8 = vector.broadcast %cst_6 : f32 to vector<128x128xf32>
    %9 = arith.mulf %8, %5 : vector<128x128xf32>
    %10 = arith.select %7, %5, %9 : vector<128x128xi1>, vector<128x128xf32>
    %c0_7 = arith.constant 0 : index
    %c0_8 = arith.constant 0 : index
    %11 = vector.load %arg4[%c0_7, %c0_8] : memref<128x128xf32, #tpu.memory_space<vmem>>, vector<128x128xf32>
    %cst_9 = arith.constant dense<0.000000e+00> : vector<128x128xf32>
    %12 = tpu.matmul %10, %11, %cst_9 {dimension_numbers = #tpu.dot_dimension_numbers<[1], [0], [0], [1], [0, 0, 1, 1], [], []>} : vector<128x128xf32>, vector<128x128xf32>, vector<128x128xf32> -> vector<128x128xf32>
    %c0_10 = arith.constant 0 : index
    %c0_11 = arith.constant 0 : index
    %13 = vector.load %arg5[%c0_10, %c0_11] : memref<1x128xf32, #tpu.memory_space<vmem>>, vector<1x128xf32>
    %14 = vector.broadcast %13 : vector<1x128xf32> to vector<128x128xf32>
    %15 = arith.addf %12, %14 : vector<128x128xf32>
    %cst_12 = arith.constant 0.000000e+00 : f32
    %16 = vector.broadcast %cst_12 : f32 to vector<128x128xf32>
    %17 = arith.cmpf ogt, %15, %16 : vector<128x128xf32>
    %cst_13 = arith.constant 0.00999999977 : f32
    %18 = vector.broadcast %cst_13 : f32 to vector<128x128xf32>
    %19 = arith.mulf %18, %15 : vector<128x128xf32>
    %20 = arith.select %17, %15, %19 : vector<128x128xi1>, vector<128x128xf32>
    %c0_14 = arith.constant 0 : index
    %c0_15 = arith.constant 0 : index
    %21 = vector.load %arg6[%c0_14, %c0_15] : memref<128x128xf32, #tpu.memory_space<vmem>>, vector<128x128xf32>
    %cst_16 = arith.constant dense<0.000000e+00> : vector<128x128xf32>
    %22 = tpu.matmul %20, %21, %cst_16 {dimension_numbers = #tpu.dot_dimension_numbers<[1], [0], [0], [1], [0, 0, 1, 1], [], []>} : vector<128x128xf32>, vector<128x128xf32>, vector<128x128xf32> -> vector<128x128xf32>
    %c0_17 = arith.constant 0 : index
    %c0_18 = arith.constant 0 : index
    %23 = vector.load %arg7[%c0_17, %c0_18] : memref<1x128xf32, #tpu.memory_space<vmem>>, vector<1x128xf32>
    %24 = vector.broadcast %23 : vector<1x128xf32> to vector<128x128xf32>
    %25 = arith.addf %22, %24 : vector<128x128xf32>
    %26 = tpu.iota {dimensions = array<i32: 1>} : vector<128x128xi32>
    %c8_i32 = arith.constant 8 : i32
    %27 = vector.broadcast %c8_i32 : i32 to vector<128x128xi32>
    %28 = arith.cmpi slt, %26, %27 : vector<128x128xi32>
    %cst_19 = arith.constant -1.000000e+30 : f32
    %29 = vector.broadcast %cst_19 : f32 to vector<128x128xf32>
    %30 = arith.select %28, %25, %29 : vector<128x128xi1>, vector<128x128xf32>
    %cst_20 = arith.constant dense<0xFF800000> : vector<128xf32>
    %31 = vector.multi_reduction <maximumf>, %30, %cst_20 [1] : vector<128x128xf32> to vector<128xf32>
    %32 = vector.shape_cast %31 : vector<128xf32> to vector<128x1xf32>
    %33 = vector.broadcast %32 : vector<128x1xf32> to vector<128x128xf32>
    %34 = arith.subf %30, %33 : vector<128x128xf32>
    %35 = math.exp %34 : vector<128x128xf32>
    %cst_21 = arith.constant dense<0.000000e+00> : vector<128xf32>
    %36 = vector.multi_reduction <add>, %35, %cst_21 [1] : vector<128x128xf32> to vector<128xf32>
    %37 = vector.shape_cast %36 : vector<128xf32> to vector<128x1xf32>
    %38 = vector.broadcast %37 : vector<128x1xf32> to vector<128x128xf32>
    %39 = arith.divf %35, %38 : vector<128x128xf32>
    %c0_22 = arith.constant 0 : index
    %c0_23 = arith.constant 0 : index
    %40 = vector.load %arg8[%c0_22, %c0_23] : memref<128x128xf32, #tpu.memory_space<vmem>>, vector<128x128xf32>
    tpu.vector_store %arg8[%c0_22, %c0_23], %39 {strides = array<i32>} : memref<128x128xf32, #tpu.memory_space<vmem>>, vector<128x128xf32>,
    return
  }
  func.func @transform_0(%arg0: i32) -> (i32, i32) {
    %c0_i32 = arith.constant 0 : i32
    %c0_i32_0 = arith.constant 0 : i32
    return %arg0, %c0_i32 : i32, i32
  }
  func.func @transform_1(%arg0: i32) -> (i32, i32) {
    %c0_i32 = arith.constant 0 : i32
    %c0_i32_0 = arith.constant 0 : i32
    %c0_i32_1 = arith.constant 0 : i32
    return %c0_i32, %c0_i32_0 : i32, i32
  }
  func.func @transform_2(%arg0: i32) -> (i32, i32) {
    %c0_i32 = arith.constant 0 : i32
    %c0_i32_0 = arith.constant 0 : i32
    %c0_i32_1 = arith.constant 0 : i32
    return %c0_i32, %c0_i32_0 : i32, i32
  }
  func.func @transform_3(%arg0: i32) -> (i32, i32) {
    %c0_i32 = arith.constant 0 : i32
    %c0_i32_0 = arith.constant 0 : i32
    %c0_i32_1 = arith.constant 0 : i32
    return %c0_i32, %c0_i32_0 : i32, i32
  }
  func.func @transform_4(%arg0: i32) -> (i32, i32) {
    %c0_i32 = arith.constant 0 : i32
    %c0_i32_0 = arith.constant 0 : i32
    %c0_i32_1 = arith.constant 0 : i32
    return %c0_i32, %c0_i32_0 : i32, i32
  }
  func.func @transform_5(%arg0: i32) -> (i32, i32) {
    %c0_i32 = arith.constant 0 : i32
    %c0_i32_0 = arith.constant 0 : i32
    %c0_i32_1 = arith.constant 0 : i32
    return %c0_i32, %c0_i32_0 : i32, i32
  }
  func.func @transform_6(%arg0: i32) -> (i32, i32) {
    %c0_i32 = arith.constant 0 : i32
    %c0_i32_0 = arith.constant 0 : i32
    %c0_i32_1 = arith.constant 0 : i32
    return %c0_i32, %c0_i32_0 : i32, i32
  }
  func.func @transform_7(%arg0: i32) -> (i32, i32) {
    %c0_i32 = arith.constant 0 : i32
    %c0_i32_0 = arith.constant 0 : i32
    return %arg0, %c0_i32 : i32, i32
  }
}

</mosaic_0001>

<bundles_post_ra>
// kernel: tpu_custom_call.1
= control target key start
LH: loop header
LB: loop body
LE: loop exit
PB: predicated region body
PF: predicated region fallthrough
CT: control target
= control target key end

     0   :  { %12 = vsyncpa [#allocation3], 0  ;;  %s2239_s0 = inlined_call_operand.vmem [shape: f32[256,32], index: 0, kind: input, shape index: {}]   ;;  %s2240_s1 = inlined_call_operand.vmem [shape: f32[32,128], index: 1, kind: input, shape index: {}]   ;;  %s2241_s2 = inlined_call_operand.vmem [shape: f32[1,128], index: 2, kind: input, shape index: {}]   ;;  %s2242_s3 = inlined_call_operand.vmem [shape: f32[128,128], index: 3, kind: input, shape index: {}]   ;;  %s2243_s4 = inlined_call_operand.vmem [shape: f32[1,128], index: 4, kind: input, shape index: {}]   ;;  %s2244_s5 = inlined_call_operand.vmem [shape: f32[128,128], index: 5, kind: input, shape index: {}]   ;;  %s2245_s6 = inlined_call_operand.vmem [shape: f32[1,128], index: 6, kind: input, shape index: {}]   ;;  %s2246_s7 = inlined_call_operand.hbm [shape: f32[256,128], index: 7, kind: output, shape index: {}]  }
   0x1   :  { %14 = vsyncpa [#allocation3 + $0x1], 0  ;;  %s1748_s24 = smov 0   ;;  %s1750_s25 = smov 0  }
   0x2   :  { %s1752_s26 = smov 0   ;;  %s1754_s27 = smov 0  }
   0x3 LB: > { %s1769_s28 = sadd.s32 4294967295, %s1703_s27   ;;  %s1188_s29 = sadd.s32 4294967294, %s1703_s27   ;;  %s1703_s27 = sphi %s1754_s27, %s2252_s27   ;;  %s1699_s26 = sphi %s1752_s26, %s2251_s26   ;;  %s1695_s25 = sphi %s1750_s25, %s2250_s25   ;;  %s1691_s24 = sphi %s1748_s24, %s2249_s24  }
   0x4   : > { %s1773_s30 = sadd.s32 1, %s1703_s27   ;;  %s179_s8 = sadd.s32 1, %s1699_s26 }
   0x5   : > { %s176_s9 = ssub.s32 %s1703_s27, %s1773_s30  ;;  %p189_p0 = scmp.ne.s32.totalorder %s1699_s26, %s1695_s25 }
   0x6   : > { %p177_p1 = scmp.eq.s32.totalorder %s176_s9, 0  ;;  %p190_p2 = scmp.eq.s32.totalorder %s1769_s28, 1 }
   0x7   : > { %p195_p3 = scmp.ne.s32.totalorder %s1695_s25, %s1691_s24  ;;  %p196_p4 = scmp.eq.s32.totalorder %s1188_s29, 1 }
   0x8   : > { %s1784_s10 = scalar_select %p177_p1, %s1699_s26, %s179_s8  }
   0x9   : > { %p1786_p5 = por %p190_p2, %p189_p0  ;;  %p1790_p6 = por %p196_p4, %p195_p3 }
   0xa   : > { %p1191_p7 = scmp.ge.s32.totalorder %s1703_s27, 1  ;;  %p241_p8 = scmp.lt.s32.totalorder %s1703_s27, 3 }
   0xc   : > { %p242_p9 = pnand %p1191_p7, %p241_p8 }
   0xd   : > { %v296_v0 = vld [vmem:[%s2240_s1] sm:$0xff] (!%p242_p9)  ;;  %v297_v1 = vld [vmem:[%s2240_s1 + $0x8] sm:$0xff] (!%p242_p9)  ;;  %v298_v2 = vld [vmem:[%s2240_s1 + $0x10] sm:$0xff] (!%p242_p9)  ;;  %s1193_s19 = sshll.u32 (!%p242_p9), %s1769_s28, 4  ;;  %vm307_vm0 = vcmask (!%p242_p9), 261120   ;;  %s270_s13 = sand.u32 (!%p242_p9), 1, %s1695_s25  }
   0xe   : > { %245 = sbr.rel (%p242_p9) target bundleno = 1039 (0x40f), region = 48  ;;  %v1448_v3 = vpack.c.bf16 (!%p242_p9), %v297_v1, %v296_v0  ;;  %v299_v4 = vld [vmem:[%s2240_s1 + $0x18] sm:$0xff] (!%p242_p9)  ;;  %p274_p10 = scmp.lt.s32.totalorder (!%p242_p9), %s1193_s19, 31  ;;  %v549_v5 = vld [vmem:[%s2242_s3] sm:$0xff] (!%p242_p9)  ;;  %v550_v6 = vld [vmem:[%s2242_s3 + $0x8] sm:$0xff] (!%p242_p9) }
   0xf   : > { %v1452_v7 = vpack.c.bf16 (!%p242_p9), %v299_v4, %v298_v2  ;;  %v1456_v8 = vpack.c.bf16 (!%p242_p9), %v550_v6, %v549_v5  ;;  %v551_v9 = vld [vmem:[%s2242_s3 + $0x10] sm:$0xff] (!%p242_p9)  ;;  %v552_v10 = vld [vmem:[%s2242_s3 + $0x18] sm:$0xff] (!%p242_p9)  ;;  %v553_v12 = vld [vmem:[%s2242_s3 + $0x20] sm:$0xff] (!%p242_p9)  ;;  %s1192_s14 = sshll.u32 (!%p242_p9), %s270_s13, 7  ;;  %s1219_s16 = sshll.u32 (!%p242_p9), %s1769_s28, 11 }
  0x10   : > { %1449 = vmatprep.subr.bf16.mxu0 (!%p242_p9), %v1448_v3  ;;  %v1460_v11 = vpack.c.bf16 (!%p242_p9), %v552_v10, %v551_v9  ;;  %v554_v13 = vld [vmem:[%s2242_s3 + $0x28] sm:$0xff] (!%p242_p9)  ;;  %v555_v16 = vld [vmem:[%s2242_s3 + $0x30] sm:$0xff] (!%p242_p9)  ;;  %v556_v17 = vld [vmem:[%s2242_s3 + $0x38] sm:$0xff] (!%p242_p9)  ;;  %s2154_s15 = scalar_lea.vmem (!%p242_p9), [#allocation2], %s1192_s14  ;;  %s2189_s20 = scalar_lea.hbm (!%p242_p9), %s2246_s7, %s1219_s16 }
  0x11   : > { %1451 = vmatpush3.bf16.msra.mxu0 (!%p242_p9), %v1448_v3  ;;  %1457 = vmatprep.subr.bf16.mxu1 (!%p242_p9), %v1456_v8  ;;  %v1464_v14 = vpack.c.bf16 (!%p242_p9), %v554_v13, %v553_v12  ;;  %v1468_v20 = vpack.c.bf16 (!%p242_p9), %v556_v17, %v555_v16  ;;  %v557_v21 = vld [vmem:[%s2242_s3 + $0x40] sm:$0xff] (!%p242_p9)  ;;  %v558_v22 = vld [vmem:[%s2242_s3 + $0x48] sm:$0xff] (!%p242_p9)  ;;  %v559_v26 = vld [vmem:[%s2242_s3 + $0x50] sm:$0xff] (!%p242_p9)  ;;  %s2198_s28 = scalar_lea.sflag (!%p242_p9), [#allocation3], %s270_s13  ;;  %s1705_s22 = smov (!%p242_p9), [#allocation2]  }
  0x12   : > { %1453 = vmatprep.subr.bf16.mxu0 (!%p242_p9), %v1452_v7  ;;  %1459 = vmatpush3.bf16.msra.mxu1 (!%p242_p9), %v1456_v8  ;;  %v1472_v25 = vpack.c.bf16 (!%p242_p9), %v558_v22, %v557_v21  ;;  %v560_v27 = vld [vmem:[%s2242_s3 + $0x58] sm:$0xff] (!%p242_p9)  ;;  %v561_v40 = vld [vmem:[%s2242_s3 + $0x60] sm:$0xff] (!%p242_p9)  ;;  %v562_v41 = vld [vmem:[%s2242_s3 + $0x68] sm:$0xff] (!%p242_p9)  ;;  %s1645_s23 = sshll.u32 (!%p242_p9), %s1705_s22, 4  ;;  %s1646_s23 = int_to_ptr.vmem [resolvable:$false] %s1645_s23 }
  0x13   : > { %1461 = vmatprep.subr.bf16.mxu1 (!%p242_p9), %v1460_v11  ;;  %v1476_v30 = vpack.c.bf16 (!%p242_p9), %v560_v27, %v559_v26  ;;  %v1480_v42 = vpack.c.bf16 (!%p242_p9), %v562_v41, %v561_v40  ;;  %v563_v43 = vld [vmem:[%s2242_s3 + $0x70] sm:$0xff] (!%p242_p9)  ;;  %v564_v44 = vld [vmem:[%s2242_s3 + $0x78] sm:$0xff] (!%p242_p9)  ;;  %v765_v46 = vld [vmem:[%s2244_s5] sm:$0xff] (!%p242_p9)  ;;  %s1647_s8 = scalar_lea.vmem (!%p242_p9), %s1646_s23, 4096 }
  0x14   : > { %v1484_v45 = vpack.c.bf16 (!%p242_p9), %v564_v44, %v563_v43  ;;  %v766_v47 = vld [vmem:[%s2244_s5 + $0x8] sm:$0xff] (!%p242_p9)  ;;  %v767_v48 = vld [vmem:[%s2244_s5 + $0x10] sm:$0xff] (!%p242_p9)  ;;  %v768_v50 = vld [vmem:[%s2244_s5 + $0x18] sm:$0xff] (!%p242_p9) }
  0x15   : > { %s2254_s19 = smov (!%p274_p10, %s1193_s19), 31  ;;  %1455 = vmatpush3.bf16.msra.mxu0 %v1452_v7  ;;  %v1488_v49 = vpack.c.bf16 %v766_v47, %v765_v46  ;;  %v1906_v51 = vpack.c.bf16 %v768_v50, %v767_v48  ;;  %v769_v52 = vld [vmem:[%s2244_s5 + $0x20] sm:$0xff]  ;;  %v770_v53 = vld [vmem:[%s2244_s5 + $0x28] sm:$0xff]  ;;  %v771_v55 = vld [vmem:[%s2244_s5 + $0x30] sm:$0xff] }
  0x16   : > { %s1194_s21 = sshll.u32 %s2254_s19, 3  ;;  %1463 = vmatpush3.bf16.msra.mxu1 %v1460_v11  ;;  %v1915_v54 = vpack.c.bf16 %v770_v53, %v769_v52  ;;  %v772_v56 = vld [vmem:[%s2244_s5 + $0x38] sm:$0xff]  ;;  %v773_v58 = vld [vmem:[%s2244_s5 + $0x40] sm:$0xff]  ;;  %v774_v59 = vld [vmem:[%s2244_s5 + $0x48] sm:$0xff] }
  0x17   : > { %s1830_s29 = scalar_lea.vmem %s2239_s0, %s1194_s21  ;;  %1465 = vmatprep.subr.bf16.mxu1 %v1464_v14  ;;  %1489 = vmatprep.subr.bf16.mxu0 %v1488_v49  ;;  %v1925_v57 = vpack.c.bf16 %v772_v56, %v771_v55  ;;  %v1935_v60 = vpack.c.bf16 %v774_v59, %v773_v58  ;;  %v775_v61 = vld [vmem:[%s2244_s5 + $0x50] sm:$0xff]  ;;  %v776_v62 = vld [vmem:[%s2244_s5 + $0x58] sm:$0xff]  ;;  %v777_v0 = vld [vmem:[%s2244_s5 + $0x60] sm:$0xff] }
  0x18   : > { %v280_v15 = vld [vmem:[%s1830_s29] sm:$0xff]  ;;  %v281_v18 = vld [vmem:[%s1830_s29 + $0x8] sm:$0xff]  ;;  %v282_v19 = vld [vmem:[%s1830_s29 + $0x10] sm:$0xff]  ;;  %v1945_v63 = vpack.c.bf16 %v776_v62, %v775_v61 }
  0x19   : > { %1312 = vmatprep.mubr.msk.f32.mxu0 %vm307_vm0, %v280_v15  ;;  %v283_v23 = vld [vmem:[%s1830_s29 + $0x18] sm:$0xff]  ;;  %v284_v24 = vld [vmem:[%s1830_s29 + $0x20] sm:$0xff]  ;;  %v285_v28 = vld [vmem:[%s1830_s29 + $0x28] sm:$0xff] }
  0x1a   : > { %1313 = vmatmul.mubr.msk.f32.vlgmr.msra.gmra.mrb[0].mxu0 %vm307_vm0, %v281_v18  ;;  %1467 = vmatpush3.bf16.msra.mxu1 %v1464_v14  ;;  %v286_v29 = vld [vmem:[%s1830_s29 + $0x30] sm:$0xff]  ;;  %v287_v31 = vld [vmem:[%s1830_s29 + $0x38] sm:$0xff]  ;;  %v288_v32 = vld [vmem:[%s1830_s29 + $0x40] sm:$0xff] }
  0x1b   : > { %1315 = vmatprep.mubr.msk.f32.mxu0 %vm307_vm0, %v282_v19  ;;  %1469 = vmatprep.subr.bf16.mxu1 %v1468_v20  ;;  %v289_v33 = vld [vmem:[%s1830_s29 + $0x48] sm:$0xff]  ;;  %v290_v34 = vld [vmem:[%s1830_s29 + $0x50] sm:$0xff]  ;;  %v291_v35 = vld [vmem:[%s1830_s29 + $0x58] sm:$0xff] }
  0x1c   : > { %v292_v36 = vld [vmem:[%s1830_s29 + $0x60] sm:$0xff]  ;;  %v293_v37 = vld [vmem:[%s1830_s29 + $0x68] sm:$0xff]  ;;  %v294_v38 = vld [vmem:[%s1830_s29 + $0x70] sm:$0xff]  ;;  %1491 = vmatpush3.bf16.msra.mxu0 %v1488_v49 }
  0x1d   : > { %v295_v39 = vld [vmem:[%s1830_s29 + $0x78] sm:$0xff]  ;;  %1493 = vmatprep.subr.bf16.mxu0 %v1906_v51  ;;  %v778_v1 = vld [vmem:[%s2244_s5 + $0x68] sm:$0xff]  ;;  %v1963_v3 = vld [vmem:[%s2241_s2] ss:$0 sm:$0xff]  ;;  %s1126_s29 = sshll.u32 %s2154_s15, 4  ;;  %s2191_s29 = int_to_ptr.vmem [resolvable:$true] %s1126_s29 }
  0x1e   : > { %1316 = vmatmul.mubr.msk.f32.gmra.mrb[2].mxu0 %vm307_vm0, %v283_v23  ;;  %1471 = vmatpush3.bf16.msra.mxu1 %v1468_v20  ;;  %v1955_v2 = vpack.c.bf16 %v778_v1, %v777_v0  ;;  %s1641_s21 = scalar_lea.vmem %s2191_s29, 2048  ;;  %p1648_p0 = scmp.lt.s32.totalorder %s2191_s29, %s1646_s23 }
  0x1f   : > { %1318 = vmatprep.mubr.msk.f32.mxu0 %vm307_vm0, %v284_v24  ;;  %1473 = vmatprep.subr.bf16.mxu1 %v1472_v25  ;;  %p1642_p11 = scmp.ne.s32.totalorder %s2191_s29, %s1641_s21  ;;  %p1649_p1 = scmp.lt.s32.totalorder %s1647_s8, %s1641_s21 }
  0x20   : > { %1495 = vmatpush3.bf16.msra.mxu0 %v1906_v51 }
  0x21   : > { %1497 = vmatprep.subr.bf16.mxu0 %v1915_v54  ;;  %p1643_p12 = pnand %p1642_p11, %p1786_p5  ;;  %p1650_p2 = por %p1649_p1, %p1648_p0 }
  0x22   : > { %1319 = vmatmul.mubr.msk.f32.gmra.mrb[4].mxu0 %vm307_vm0, %v285_v28  ;;  %1475 = vmatpush3.bf16.msra.mxu1 %v1472_v25 }
  0x23   : > { %1321 = vmatprep.mubr.msk.f32.mxu0 %vm307_vm0, %v286_v29  ;;  %1477 = vmatprep.subr.bf16.mxu1 %v1476_v30  ;;  %p1644_p13 = pneg %p1643_p12 }
  0x24   : > { %1499 = vmatpush3.bf16.msra.mxu0 %v1915_v54 }
  0x25   : > { %1501 = vmatprep.subr.bf16.mxu0 %v1925_v57  ;;  %p1651_p3 = pnand %p1650_p2, %p1644_p13 }
  0x26   : > { %1322 = vmatmul.mubr.msk.f32.gmra.mrb[6].mxu0 %vm307_vm0, %v287_v31  ;;  %1479 = vmatpush3.bf16.msra.mxu1 %v1476_v30 }
  0x27   : > { %1324 = vmatprep.mubr.msk.f32.mxu0 %vm307_vm0, %v288_v32  ;;  %1481 = vmatprep.subr.bf16.mxu1 %v1480_v42 }
  0x28   : > { %1503 = vmatpush3.bf16.msra.mxu0 %v1925_v57 }
  0x29   : > { %1505 = vmatprep.subr.bf16.mxu0 %v1935_v60 }
  0x2a   : > { %1325 = vmatmul.mubr.msk.f32.gmra.mrb[8].mxu0 %vm307_vm0, %v289_v33  ;;  %1483 = vmatpush3.bf16.msra.mxu1 %v1480_v42 }
  0x2b   : > { %1327 = vmatprep.mubr.msk.f32.mxu0 %vm307_vm0, %v290_v34  ;;  %1485 = vmatprep.subr.bf16.mxu1 %v1484_v45 }
  0x2c   : > { %1507 = vmatpush3.bf16.msra.mxu0 %v1935_v60 }
  0x2d   : > { %1509 = vmatprep.subr.bf16.mxu0 %v1945_v63 }
  0x2e   : > { %1328 = vmatmul.mubr.msk.f32.gmra.mrb[10].mxu0 %vm307_vm0, %v291_v35  ;;  %1487 = vmatpush3.bf16.msra.mxu1 %v1484_v45 }
  0x2f   : > { %1330 = vmatprep.mubr.msk.f32.mxu0 %vm307_vm0, %v292_v36  ;;  %1520 = vmatprep.subr.bf16.mxu1 %v1488_v49 }
  0x30   : > { %1511 = vmatpush3.bf16.msra.mxu0 %v1945_v63 }
  0x31   : > { %1513 = vmatprep.subr.bf16.mxu0 %v1955_v2 }
  0x32   : > { %1331 = vmatmul.mubr.msk.f32.gmra.mrb[12].mxu0 %vm307_vm0, %v293_v37 }
  0x33   : > { %1333 = vmatprep.mubr.msk.f32.mxu0 %vm307_vm0, %v294_v38 }
  0x34   : > { %1515 = vmatpush3.bf16.msra.mxu0 %v1955_v2 }
  0x36   : > { %1334 = vmatmul.mubr.msk.f32.gmra.mrb[14].mxu0 %vm307_vm0, %v295_v39 }
  0xed   : > { %v1314_v4 = vpop.f32.mrb[0].mxu0 }
  0xee   : > { %v428_v5 = vadd.f32 %v1314_v4, %v1963_v3  ;;  %v422_v6 = vpop.f32.mrb[1].mxu0 }
  0xef   : > { %v423_v7 = vadd.f32 %v1963_v3, %v422_v6 }
  0xf0   : > { %v518_v8 = vmul.f32 0.01, %v428_v5  ;;  %vm502_vm2 = vcmp.gt.f32.partialorder %v428_v5, 0.0 }
  0xf1   : > { %v1317_v9 = vpop.f32.mrb[2].mxu0  ;;  %vm501_vm1 = vcmp.gt.f32.partialorder %v423_v7, 0.0  ;;  %v517_v10 = vmul.f32 0.01, %v423_v7 }
  0xf2   : > { %v438_v11 = vadd.f32 %v1317_v9, %v1963_v3  ;;  %v432_v12 = vpop.f32.mrb[3].mxu0  ;;  %v534_v16 = vsel %vm502_vm2, %v428_v5, %v518_v8 }
  0xf3   : > { %v433_v13 = vadd.f32 %v1963_v3, %v432_v12  ;;  %v533_v14 = vsel %vm501_vm1, %v423_v7, %v517_v10 }
  0xf4   : > { %v520_v15 = vmul.f32 0.01, %v438_v11  ;;  %1368 = vmatprep.mubr.f32.mxu1 %v533_v14  ;;  %vm504_vm4 = vcmp.gt.f32.partialorder %v438_v11, 0.0 }
  0xf5   : > { %v519_v17 = vmul.f32 0.01, %v433_v13  ;;  %v1320_v18 = vpop.f32.mrb[4].mxu0  ;;  %1369 = vmatmul.mubr.f32.vlgmr.msra.gmra.mrb[0].mxu1 %v534_v16  ;;  %vm503_vm3 = vcmp.gt.f32.partialorder %v433_v13, 0.0 }
  0xf6   : > { %v448_v19 = vadd.f32 %v1320_v18, %v1963_v3  ;;  %v442_v20 = vpop.f32.mrb[5].mxu0  ;;  %1528 = vmatpush3.bf16.msra.mxu1 %v1488_v49  ;;  %v536_v24 = vsel %vm504_vm4, %v438_v11, %v520_v15 }
  0xf7   : > { %v443_v21 = vadd.f32 %v1963_v3, %v442_v20  ;;  %v535_v22 = vsel %vm503_vm3, %v433_v13, %v519_v17  ;;  %1521 = vmatprep.subr.bf16.mxu1 %v1906_v51 }
  0xf8   : > { %v522_v23 = vmul.f32 0.01, %v448_v19  ;;  %1371 = vmatprep.mubr.f32.mxu1 %v535_v22  ;;  %vm506_vm5 = vcmp.gt.f32.partialorder %v448_v19, 0.0 }
  0xf9   : > { %v521_v25 = vmul.f32 0.01, %v443_v21  ;;  %v1323_v26 = vpop.f32.mrb[6].mxu0  ;;  %1372 = vmatmul.mubr.f32.gmra.mrb[2].mxu1 %v536_v24  ;;  %vm505_vm6 = vcmp.gt.f32.partialorder %v443_v21, 0.0 }
  0xfa   : > { %v458_v27 = vadd.f32 %v1323_v26, %v1963_v3  ;;  %v452_v28 = vpop.f32.mrb[7].mxu0  ;;  %v538_v29 = vsel %vm506_vm5, %v448_v19, %v522_v23  ;;  %1529 = vmatpush3.bf16.msra.mxu1 %v1906_v51 }
  0xfb   : > { %v453_v30 = vadd.f32 %v1963_v3, %v452_v28  ;;  %v537_v31 = vsel %vm505_vm6, %v443_v21, %v521_v25  ;;  %1522 = vmatprep.subr.bf16.mxu1 %v1915_v54 }
  0xfc   : > { %v524_v32 = vmul.f32 0.01, %v458_v27  ;;  %1374 = vmatprep.mubr.f32.mxu1 %v537_v31  ;;  %vm508_vm7 = vcmp.gt.f32.partialorder %v458_v27, 0.0 }
  0xfd   : > { %v523_v33 = vmul.f32 0.01, %v453_v30  ;;  %v1326_v34 = vpop.f32.mrb[8].mxu0  ;;  %1375 = vmatmul.mubr.f32.gmra.mrb[4].mxu1 %v538_v29  ;;  %vm507_vm8 = vcmp.gt.f32.partialorder %v453_v30, 0.0 }
  0xfe   : > { %v468_v35 = vadd.f32 %v1326_v34, %v1963_v3  ;;  %v462_v36 = vpop.f32.mrb[9].mxu0  ;;  %v540_v37 = vsel %vm508_vm7, %v458_v27, %v524_v32  ;;  %1530 = vmatpush3.bf16.msra.mxu1 %v1915_v54 }
  0xff   : > { %v463_v38 = vadd.f32 %v1963_v3, %v462_v36  ;;  %v539_v39 = vsel %vm507_vm8, %v453_v30, %v523_v33  ;;  %1523 = vmatprep.subr.bf16.mxu1 %v1925_v57 }
 0x100   : > { %v526_v40 = vmul.f32 0.01, %v468_v35  ;;  %1377 = vmatprep.mubr.f32.mxu1 %v539_v39  ;;  %vm510_vm9 = vcmp.gt.f32.partialorder %v468_v35, 0.0 }
 0x101   : > { %v525_v41 = vmul.f32 0.01, %v463_v38  ;;  %v1329_v42 = vpop.f32.mrb[10].mxu0  ;;  %1378 = vmatmul.mubr.f32.gmra.mrb[6].mxu1 %v540_v37  ;;  %vm509_vm10 = vcmp.gt.f32.partialorder %v463_v38, 0.0 }
 0x102   : > { %v478_v43 = vadd.f32 %v1329_v42, %v1963_v3  ;;  %v472_v44 = vpop.f32.mrb[11].mxu0  ;;  %v542_v45 = vsel %vm510_vm9, %v468_v35, %v526_v40  ;;  %1531 = vmatpush3.bf16.msra.mxu1 %v1925_v57 }
 0x103   : > { %v473_v46 = vadd.f32 %v1963_v3, %v472_v44  ;;  %v541_v47 = vsel %vm509_vm10, %v463_v38, %v525_v41  ;;  %1524 = vmatprep.subr.bf16.mxu1 %v1935_v60 }
 0x104   : > { %v528_v48 = vmul.f32 0.01, %v478_v43  ;;  %1380 = vmatprep.mubr.f32.mxu1 %v541_v47  ;;  %vm512_vm11 = vcmp.gt.f32.partialorder %v478_v43, 0.0 }
 0x105   : > { %v527_v49 = vmul.f32 0.01, %v473_v46  ;;  %v1332_v50 = vpop.f32.mrb[12].mxu0  ;;  %1381 = vmatmul.mubr.f32.gmra.mrb[8].mxu1 %v542_v45  ;;  %vm511_vm12 = vcmp.gt.f32.partialorder %v473_v46, 0.0 }
 0x106   : > { %v488_v51 = vadd.f32 %v1332_v50, %v1963_v3  ;;  %v482_v52 = vpop.f32.mrb[13].mxu0  ;;  %v544_v53 = vsel %vm512_vm11, %v478_v43, %v528_v48  ;;  %1532 = vmatpush3.bf16.msra.mxu1 %v1935_v60 }
 0x107   : > { %v483_v54 = vadd.f32 %v1963_v3, %v482_v52  ;;  %v543_v55 = vsel %vm511_vm12, %v473_v46, %v527_v49  ;;  %1525 = vmatprep.subr.bf16.mxu1 %v1945_v63 }
 0x108   : > { %v530_v56 = vmul.f32 0.01, %v488_v51  ;;  %1383 = vmatprep.mubr.f32.mxu1 %v543_v55  ;;  %vm514_vm13 = vcmp.gt.f32.partialorder %v488_v51, 0.0 }
 0x109   : > { %v529_v57 = vmul.f32 0.01, %v483_v54  ;;  %v1335_v58 = vpop.f32.mrb[14].mxu0  ;;  %1384 = vmatmul.mubr.f32.gmra.mrb[10].mxu1 %v544_v53  ;;  %vm513_vm14 = vcmp.gt.f32.partialorder %v483_v54, 0.0 }
 0x10a   : > { %v498_v59 = vadd.f32 %v1335_v58, %v1963_v3  ;;  %v492_v61 = vpop.f32.mrb[15].mxu0  ;;  %v546_v62 = vsel %vm514_vm13, %v488_v51, %v530_v56  ;;  %1533 = vmatpush3.bf16.msra.mxu1 %v1945_v63  ;;  %v779_v63 = vld [vmem:[%s2244_s5 + $0x70] sm:$0xff] }
 0x10b   : > { %v493_v60 = vadd.f32 %v1963_v3, %v492_v61  ;;  %v545_v0 = vsel %vm513_vm14, %v483_v54, %v529_v57  ;;  %1526 = vmatprep.subr.bf16.mxu1 %v1955_v2  ;;  %v780_v3 = vld [vmem:[%s2244_s5 + $0x78] sm:$0xff] }
 0x10c   : > { %v532_v1 = vmul.f32 0.01, %v498_v59  ;;  %1386 = vmatprep.mubr.f32.mxu1 %v545_v0  ;;  %vm516_vm15 = vcmp.gt.f32.partialorder %v498_v59, 0.0  ;;  %v1516_v7 = vpack.c.bf16 %v780_v3, %v779_v63 }
 0x10d   : > { %v531_v4 = vmul.f32 0.01, %v493_v60  ;;  %1387 = vmatmul.mubr.f32.gmra.mrb[12].mxu1 %v546_v62  ;;  %vm515_vm0 = vcmp.gt.f32.partialorder %v493_v60, 0.0 }
 0x10e   : > { %v548_v5 = vsel %vm516_vm15, %v498_v59, %v532_v1  ;;  %1534 = vmatpush3.bf16.msra.mxu1 %v1955_v2  ;;  %1517 = vmatprep.subr.bf16.mxu0 %v1516_v7  ;;  %v2002_v2 = vld [vmem:[%s2243_s4] ss:$0 sm:$0xff] }
 0x10f   : > { %v547_v6 = vsel %vm515_vm0, %v493_v60, %v531_v4  ;;  %1527 = vmatprep.subr.bf16.mxu1 %v1516_v7  ;;  %1519 = vmatpush3.bf16.msra.mxu0 %v1516_v7 }
 0x110   : > { %1389 = vmatprep.mubr.f32.mxu1 %v547_v6 }
 0x111   : > { %1390 = vmatmul.mubr.f32.gmra.mrb[14].mxu1 %v548_v5 }
 0x112   : > { %1535 = vmatpush3.bf16.msra.mxu1 %v1516_v7 }
 0x1c8   : > { %v1370_v8 = vpop.f32.mrb[0].mxu1 }
 0x1c9   : > { %v644_v9 = vadd.f32 %v1370_v8, %v2002_v2  ;;  %v638_v10 = vpop.f32.mrb[1].mxu1 }
 0x1ca   : > { %v639_v11 = vadd.f32 %v2002_v2, %v638_v10 }
 0x1cb   : > { %v734_v12 = vmul.f32 0.01, %v644_v9  ;;  %vm718_vm1 = vcmp.gt.f32.partialorder %v644_v9, 0.0 }
 0x1cc   : > { %v733_v13 = vmul.f32 0.01, %v639_v11  ;;  %v1373_v14 = vpop.f32.mrb[2].mxu1  ;;  %vm717_vm2 = vcmp.gt.f32.partialorder %v639_v11, 0.0 }
 0x1cd   : > { %v654_v15 = vadd.f32 %v1373_v14, %v2002_v2  ;;  %v648_v16 = vpop.f32.mrb[3].mxu1  ;;  %v750_v19 = vsel %vm718_vm1, %v644_v9, %v734_v12  ;;  %v933_v9 = vlaneseq }
 0x1ce   : > { %v649_v17 = vadd.f32 %v2002_v2, %v648_v16  ;;  %v749_v18 = vsel %vm717_vm2, %v639_v11, %v733_v13  ;;  %v1213_v11 = vld [vmem:[%s2245_s6] ss:$0 sm:$0xff] }
 0x1cf   : > { %v736_v20 = vmul.f32 0.01, %v654_v15  ;;  %1424 = vmatprep.mubr.f32.mxu0 %v749_v18  ;;  %vm720_vm4 = vcmp.gt.f32.partialorder %v654_v15, 0.0  ;;  %v2020_v10 = vand.u32 127, %v933_v9 }
 0x1d0   : > { %v735_v21 = vmul.f32 0.01, %v649_v17  ;;  %v1376_v22 = vpop.f32.mrb[4].mxu1  ;;  %1425 = vmatmul.mubr.f32.vlgmr.msra.gmra.mrb[16].mxu0 %v750_v19  ;;  %vm719_vm3 = vcmp.gt.f32.partialorder %v649_v17, 0.0 }
 0x1d1   : > { %v664_v23 = vadd.f32 %v1376_v22, %v2002_v2  ;;  %v658_v24 = vpop.f32.mrb[5].mxu1  ;;  %v752_v28 = vsel %vm720_vm4, %v654_v15, %v736_v20  ;;  %vm935_vm1 = vcmp.lt.s32.totalorder %v2020_v10, 8 }
 0x1d2   : > { %v659_v25 = vadd.f32 %v2002_v2, %v658_v24  ;;  %v751_v26 = vsel %vm719_vm3, %v649_v17, %v735_v21 }
 0x1d3   : > { %v738_v27 = vmul.f32 0.01, %v664_v23  ;;  %1427 = vmatprep.mubr.f32.mxu0 %v751_v26  ;;  %vm722_vm6 = vcmp.gt.f32.partialorder %v664_v23, 0.0 }
 0x1d4   : > { %v737_v29 = vmul.f32 0.01, %v659_v25  ;;  %v1379_v30 = vpop.f32.mrb[6].mxu1  ;;  %1428 = vmatmul.mubr.f32.gmra.mrb[18].mxu0 %v752_v28  ;;  %vm721_vm5 = vcmp.gt.f32.partialorder %v659_v25, 0.0 }
 0x1d5   : > { %v674_v31 = vadd.f32 %v1379_v30, %v2002_v2  ;;  %v668_v32 = vpop.f32.mrb[7].mxu1  ;;  %v754_v36 = vsel %vm722_vm6, %v664_v23, %v738_v27 }
 0x1d6   : > { %v669_v33 = vadd.f32 %v2002_v2, %v668_v32  ;;  %v753_v34 = vsel %vm721_vm5, %v659_v25, %v737_v29 }
 0x1d7   : > { %v740_v35 = vmul.f32 0.01, %v674_v31  ;;  %1430 = vmatprep.mubr.f32.mxu0 %v753_v34  ;;  %vm724_vm8 = vcmp.gt.f32.partialorder %v674_v31, 0.0 }
 0x1d8   : > { %v739_v37 = vmul.f32 0.01, %v669_v33  ;;  %v1382_v38 = vpop.f32.mrb[8].mxu1  ;;  %1431 = vmatmul.mubr.f32.gmra.mrb[20].mxu0 %v754_v36  ;;  %vm723_vm7 = vcmp.gt.f32.partialorder %v669_v33, 0.0 }
 0x1d9   : > { %v684_v39 = vadd.f32 %v1382_v38, %v2002_v2  ;;  %v678_v40 = vpop.f32.mrb[9].mxu1  ;;  %v756_v44 = vsel %vm724_vm8, %v674_v31, %v740_v35 }
 0x1da   : > { %v679_v41 = vadd.f32 %v2002_v2, %v678_v40  ;;  %v755_v42 = vsel %vm723_vm7, %v669_v33, %v739_v37 }
 0x1db   : > { %v742_v43 = vmul.f32 0.01, %v684_v39  ;;  %1433 = vmatprep.mubr.f32.mxu0 %v755_v42  ;;  %vm726_vm10 = vcmp.gt.f32.partialorder %v684_v39, 0.0 }
 0x1dc   : > { %v741_v45 = vmul.f32 0.01, %v679_v41  ;;  %v1385_v46 = vpop.f32.mrb[10].mxu1  ;;  %1434 = vmatmul.mubr.f32.gmra.mrb[22].mxu0 %v756_v44  ;;  %vm725_vm9 = vcmp.gt.f32.partialorder %v679_v41, 0.0 }
 0x1dd   : > { %v694_v47 = vadd.f32 %v1385_v46, %v2002_v2  ;;  %v688_v48 = vpop.f32.mrb[11].mxu1  ;;  %v758_v52 = vsel %vm726_vm10, %v684_v39, %v742_v43 }
 0x1de   : > { %v689_v49 = vadd.f32 %v2002_v2, %v688_v48  ;;  %v757_v50 = vsel %vm725_vm9, %v679_v41, %v741_v45 }
 0x1df   : > { %v744_v51 = vmul.f32 0.01, %v694_v47  ;;  %1436 = vmatprep.mubr.f32.mxu0 %v757_v50  ;;  %vm728_vm12 = vcmp.gt.f32.partialorder %v694_v47, 0.0 }
 0x1e0   : > { %v743_v53 = vmul.f32 0.01, %v689_v49  ;;  %v1388_v54 = vpop.f32.mrb[12].mxu1  ;;  %1437 = vmatmul.mubr.f32.gmra.mrb[24].mxu0 %v758_v52  ;;  %vm727_vm11 = vcmp.gt.f32.partialorder %v689_v49, 0.0 }
 0x1e1   : > { %v704_v55 = vadd.f32 %v1388_v54, %v2002_v2  ;;  %v698_v56 = vpop.f32.mrb[13].mxu1  ;;  %v760_v61 = vsel %vm728_vm12, %v694_v47, %v744_v51 }
 0x1e2   : > { %v699_v57 = vadd.f32 %v2002_v2, %v698_v56  ;;  %v759_v58 = vsel %vm727_vm11, %v689_v49, %v743_v53 }
 0x1e3   : > { %v746_v59 = vmul.f32 0.01, %v704_v55  ;;  %1439 = vmatprep.mubr.f32.mxu0 %v759_v58  ;;  %vm730_vm14 = vcmp.gt.f32.partialorder %v704_v55, 0.0 }
 0x1e4   : > { %v745_v62 = vmul.f32 0.01, %v699_v57  ;;  %v1391_v60 = vpop.f32.mrb[14].mxu1  ;;  %1440 = vmatmul.mubr.f32.gmra.mrb[26].mxu0 %v760_v61  ;;  %vm729_vm13 = vcmp.gt.f32.partialorder %v699_v57, 0.0 }
 0x1e5   : > { %v714_v0 = vadd.f32 %v1391_v60, %v2002_v2  ;;  %v708_v1 = vpop.f32.mrb[15].mxu1  ;;  %v762_v63 = vsel %vm730_vm14, %v704_v55, %v746_v59 }
 0x1e6   : > { %v709_v4 = vadd.f32 %v2002_v2, %v708_v1  ;;  %v761_v5 = vsel %vm729_vm13, %v699_v57, %v745_v62 }
 0x1e7   : > { %v748_v6 = vmul.f32 0.01, %v714_v0  ;;  %1442 = vmatprep.mubr.f32.mxu0 %v761_v5  ;;  %vm732_vm15 = vcmp.gt.f32.partialorder %v714_v0, 0.0 }
 0x1e8   : > { %v747_v3 = vmul.f32 0.01, %v709_v4  ;;  %1443 = vmatmul.mubr.f32.gmra.mrb[28].mxu0 %v762_v63  ;;  %vm731_vm0 = vcmp.gt.f32.partialorder %v709_v4, 0.0 }
 0x1e9   : > { %v764_v8 = vsel %vm732_vm15, %v714_v0, %v748_v6 }
 0x1ea   : > { %v763_v7 = vsel %vm731_vm0, %v709_v4, %v747_v3 }
 0x1eb   : > { %1445 = vmatprep.mubr.f32.mxu1 %v763_v7 }
 0x1ec   : > { %1446 = vmatmul.mubr.f32.vlgmr.msra.gmra.mrb[16].mxu1 %v764_v8 }
 0x2a3   : > { %v1426_v2 = vpop.f32.mrb[16].mxu0 }
 0x2a4   : > { %v860_v12 = vadd.f32 %v1426_v2, %v1213_v11  ;;  %v854_v13 = vpop.f32.mrb[17].mxu0 }
 0x2a5   : > { %v855_v14 = vadd.f32 %v1213_v11, %v854_v13 }
 0x2a6   : > { %v937_v15 = vsel %vm935_vm1, %v860_v12, -1e+30 }
 0x2a7   : > { %954 = vmax.xlane.f32.xlu0 %v937_v15  ;;  %v1429_v16 = vpop.f32.mrb[18].mxu0  ;;  %v936_v21 = vsel %vm935_vm1, %v855_v14, -1e+30 }
 0x2a8   : > { %v870_v17 = vadd.f32 %v1429_v16, %v1213_v11  ;;  %v864_v18 = vpop.f32.mrb[19].mxu0 }
 0x2a9   : > { %v865_v19 = vadd.f32 %v1213_v11, %v864_v18 }
 0x2aa   : > { %v939_v20 = vsel %vm935_vm1, %v870_v17, -1e+30 }
 0x2ab   : > { %958 = vmax.xlane.f32.xlu1 %v939_v20  ;;  %v1432_v22 = vpop.f32.mrb[20].mxu0  ;;  %952 = vmax.xlane.f32.xlu0 %v936_v21  ;;  %v938_v26 = vsel %vm935_vm1, %v865_v19, -1e+30 }
 0x2ac   : > { %v874_v23 = vpop.f32.mrb[21].mxu0  ;;  %v880_v25 = vadd.f32 %v1432_v22, %v1213_v11 }
 0x2ad   : > { %v875_v24 = vadd.f32 %v1213_v11, %v874_v23 }
 0x2ae   : > { %v941_v32 = vsel %vm935_vm1, %v880_v25, -1e+30 }
 0x2af   : > { %v1435_v27 = vpop.f32.mrb[22].mxu0  ;;  %956 = vmax.xlane.f32.xlu1 %v938_v26  ;;  %v2036_v28 = vsel %vm935_vm1, %v875_v24, -1e+30 }
 0x2b0   : > { %v884_v29 = vpop.f32.mrb[23].mxu0  ;;  %960 = vmax.xlane.f32.xlu0 %v2036_v28  ;;  %v890_v31 = vadd.f32 %v1435_v27, %v1213_v11 }
 0x2b1   : > { %v885_v30 = vadd.f32 %v1213_v11, %v884_v29 }
 0x2b2   : > { %v2048_v38 = vsel %vm935_vm1, %v890_v31, -1e+30 }
 0x2b3   : > { %v1438_v33 = vpop.f32.mrb[24].mxu0  ;;  %962 = vmax.xlane.f32.xlu1 %v941_v32  ;;  %v2043_v34 = vsel %vm935_vm1, %v885_v30, -1e+30 }
 0x2b4   : > { %v894_v35 = vpop.f32.mrb[25].mxu0  ;;  %964 = vmax.xlane.f32.xlu0 %v2043_v34  ;;  %v900_v37 = vadd.f32 %v1438_v33, %v1213_v11 }
 0x2b5   : > { %v895_v36 = vadd.f32 %v1213_v11, %v894_v35 }
 0x2b6   : > { %v2058_v44 = vsel %vm935_vm1, %v900_v37, -1e+30 }
 0x2b7   : > { %v1441_v39 = vpop.f32.mrb[26].mxu0  ;;  %966 = vmax.xlane.f32.xlu1 %v2048_v38  ;;  %v2053_v40 = vsel %vm935_vm1, %v895_v36, -1e+30 }
 0x2b8   : > { %v904_v41 = vpop.f32.mrb[27].mxu0  ;;  %968 = vmax.xlane.f32.xlu0 %v2053_v40  ;;  %v910_v43 = vadd.f32 %v1441_v39, %v1213_v11 }
 0x2b9   : > { %v905_v42 = vadd.f32 %v1213_v11, %v904_v41 }
 0x2ba   : > { %v2068_v50 = vsel %vm935_vm1, %v910_v43, -1e+30 }
 0x2bb   : > { %v1444_v45 = vpop.f32.mrb[28].mxu0  ;;  %970 = vmax.xlane.f32.xlu1 %v2058_v44  ;;  %v2063_v46 = vsel %vm935_vm1, %v905_v42, -1e+30 }
 0x2bc   : > { %v914_v47 = vpop.f32.mrb[29].mxu0  ;;  %972 = vmax.xlane.f32.xlu0 %v2063_v46  ;;  %v920_v49 = vadd.f32 %v1444_v45, %v1213_v11 }
 0x2bd   : > { %v915_v48 = vadd.f32 %v1213_v11, %v914_v47 }
 0x2be   : > { %v2078_v56 = vsel %vm935_vm1, %v920_v49, -1e+30 }
 0x2bf   : > { %v1447_v51 = vpop.f32.mrb[16].mxu1  ;;  %974 = vmax.xlane.f32.xlu1 %v2068_v50  ;;  %v2073_v52 = vsel %vm935_vm1, %v915_v48, -1e+30 }
 0x2c0   : > { %v924_v53 = vpop.f32.mrb[17].mxu1  ;;  %976 = vmax.xlane.f32.xlu0 %v2073_v52  ;;  %v930_v55 = vadd.f32 %v1447_v51, %v1213_v11 }
 0x2c1   : > { %v925_v54 = vadd.f32 %v1213_v11, %v924_v53 }
 0x2c2   : > { %v2088_v58 = vsel %vm935_vm1, %v930_v55, -1e+30 }
 0x2c3   : > { %978 = vmax.xlane.f32.xlu1 %v2078_v56  ;;  %v2083_v57 = vsel %vm935_vm1, %v925_v54, -1e+30 }
 0x2c4   : > { %980 = vmax.xlane.f32.xlu0 %v2083_v57 }
 0x2c7   : > { %982 = vmax.xlane.f32.xlu1 %v2088_v58 }
 0x334   : > { %v955_v59 = vpop.xlane.xlu0 %954 }
 0x335   : > { %v985_v61 = vsub.f32 %v937_v15, %v955_v59 }
 0x337   : > { %v1002_v62 = vmul.f32 1.442695, %v985_v61 }
 0x338   : > { %v959_v60 = vpop.xlane.xlu1 %958  ;;  %v953_v0 = vpop.xlane.xlu0 %952 }
 0x339   : > { %1577 = vpow2.f32 %v1002_v62  ;;  %v987_v1 = vsub.f32 %v939_v20, %v959_v60  ;;  %v984_v4 = vsub.f32 %v936_v21, %v953_v0 }
 0x33b   : > { %v1006_v5 = vmul.f32 1.442695, %v987_v1  ;;  %v1000_v6 = vmul.f32 1.442695, %v984_v4 }
 0x33c   : > { %v957_v63 = vpop.xlane.xlu1 %956 }
 0x33d   : > { %1579 = vpow2.f32 %v1006_v5  ;;  %v986_v3 = vsub.f32 %v938_v26, %v957_v63  ;;  %v961_v7 = vpop.xlane.xlu0 %960 }
 0x33e   : > { %1581 = vpow2.f32 %v1000_v6  ;;  %v988_v8 = vsub.f32 %v2036_v28, %v961_v7 }
 0x33f   : > { %v1004_v9 = vmul.f32 1.442695, %v986_v3 }
 0x340   : > { %v963_v10 = vpop.xlane.xlu1 %962  ;;  %v1008_v12 = vmul.f32 1.442695, %v988_v8 }
 0x341   : > { %1583 = vpow2.f32 %v1004_v9  ;;  %v989_v11 = vsub.f32 %v941_v32, %v963_v10  ;;  %v965_v2 = vpop.xlane.xlu0 %964 }
 0x342   : > { %v990_v13 = vsub.f32 %v2043_v34, %v965_v2 }
 0x343   : > { %v2093_v14 = vpop.eup %1577  ;;  %v1010_v15 = vmul.f32 1.442695, %v989_v11 }
 0x344   : > { %1034 = vadd.xlane.f32.xlu1 %v2093_v14  ;;  %v967_v16 = vpop.xlane.xlu1 %966  ;;  %v1012_v19 = vmul.f32 1.442695, %v990_v13 }
 0x345   : > { %1585 = vpow2.f32 %v1010_v15  ;;  %v991_v17 = vsub.f32 %v2048_v38, %v967_v16  ;;  %v969_v18 = vpop.xlane.xlu0 %968 }
 0x346   : > { %1587 = vpow2.f32 %v1008_v12  ;;  %v992_v20 = vsub.f32 %v2053_v40, %v969_v18 }
 0x347   : > { %v2098_v21 = vpop.eup %1579  ;;  %v1014_v22 = vmul.f32 1.442695, %v991_v17 }
 0x348   : > { %v2100_v23 = vpop.eup %1581  ;;  %1038 = vadd.xlane.f32.xlu1 %v2098_v21  ;;  %v971_v24 = vpop.xlane.xlu1 %970  ;;  %v1016_v27 = vmul.f32 1.442695, %v992_v20 }
 0x349   : > { %1589 = vpow2.f32 %v1014_v22  ;;  %v993_v25 = vsub.f32 %v2058_v44, %v971_v24  ;;  %1032 = vadd.xlane.f32.xlu0 %v2100_v23  ;;  %v973_v26 = vpop.xlane.xlu0 %972 }
 0x34a   : > { %1591 = vpow2.f32 %v1012_v19  ;;  %v994_v28 = vsub.f32 %v2063_v46, %v973_v26 }
 0x34b   : > { %v2106_v29 = vpop.eup %1583  ;;  %v1018_v30 = vmul.f32 1.442695, %v993_v25 }
 0x34c   : > { %v975_v31 = vpop.xlane.xlu1 %974  ;;  %v1020_v34 = vmul.f32 1.442695, %v994_v28 }
 0x34d   : > { %1593 = vpow2.f32 %v1018_v30  ;;  %v995_v32 = vsub.f32 %v2068_v50, %v975_v31  ;;  %1036 = vadd.xlane.f32.xlu0 %v2106_v29  ;;  %v977_v33 = vpop.xlane.xlu0 %976 }
 0x34e   : > { %1595 = vpow2.f32 %v1016_v27  ;;  %v996_v35 = vsub.f32 %v2073_v52, %v977_v33 }
 0x34f   : > { %v2111_v36 = vpop.eup %1585  ;;  %v1022_v37 = vmul.f32 1.442695, %v995_v32 }
 0x350   : > { %v2113_v38 = vpop.eup %1587  ;;  %1042 = vadd.xlane.f32.xlu1 %v2111_v36  ;;  %v979_v39 = vpop.xlane.xlu1 %978  ;;  %v1024_v42 = vmul.f32 1.442695, %v996_v35 }
 0x351   : > { %1597 = vpow2.f32 %v1022_v37  ;;  %v997_v40 = vsub.f32 %v2078_v56, %v979_v39  ;;  %1040 = vadd.xlane.f32.xlu0 %v2113_v38  ;;  %v981_v41 = vpop.xlane.xlu0 %980 }
 0x352   : > { %1599 = vpow2.f32 %v1020_v34  ;;  %v998_v43 = vsub.f32 %v2083_v57, %v981_v41 }
 0x353   : > { %v2119_v44 = vpop.eup %1589  ;;  %v1026_v45 = vmul.f32 1.442695, %v997_v40 }
 0x354   : > { %v2121_v46 = vpop.eup %1591  ;;  %1046 = vadd.xlane.f32.xlu1 %v2119_v44  ;;  %v983_v47 = vpop.xlane.xlu1 %982  ;;  %v1028_v49 = vmul.f32 1.442695, %v998_v43 }
 0x355   : > { %1601 = vpow2.f32 %v1026_v45  ;;  %v999_v48 = vsub.f32 %v2088_v58, %v983_v47  ;;  %1044 = vadd.xlane.f32.xlu0 %v2121_v46 }
 0x356   : > { %1603 = vpow2.f32 %v1024_v42 }
 0x357   : > { %v2126_v50 = vpop.eup %1593  ;;  %v1030_v51 = vmul.f32 1.442695, %v999_v48 }
 0x358   : > { %v2128_v52 = vpop.eup %1595  ;;  %1050 = vadd.xlane.f32.xlu1 %v2126_v50 }
 0x359   : > { %1605 = vpow2.f32 %v1030_v51  ;;  %1048 = vadd.xlane.f32.xlu0 %v2128_v52 }
 0x35a   : > { %1607 = vpow2.f32 %v1028_v49 }
 0x35b   : > { %v2132_v53 = vpop.eup %1597 }
 0x35c   : > { %v2134_v54 = vpop.eup %1599  ;;  %1054 = vadd.xlane.f32.xlu1 %v2132_v53 }
 0x35d   : > { %1052 = vadd.xlane.f32.xlu0 %v2134_v54 }
 0x35f   : > { %v2138_v55 = vpop.eup %1601 }
 0x360   : > { %v2140_v56 = vpop.eup %1603  ;;  %1058 = vadd.xlane.f32.xlu1 %v2138_v55 }
 0x361   : > { %1056 = vadd.xlane.f32.xlu0 %v2140_v56 }
 0x363   : > { %v2144_v57 = vpop.eup %1605 }
 0x364   : > { %v2146_v58 = vpop.eup %1607  ;;  %1062 = vadd.xlane.f32.xlu1 %v2144_v57 }
 0x365   : > { %1060 = vadd.xlane.f32.xlu0 %v2146_v58 }
 0x3d1   : > { %v1035_v59 = vpop.xlane.xlu1 %1034 }
 0x3d2   : > { %1609 = vrcp.f32 %v1035_v59 }
 0x3d5   : > { %v1039_v61 = vpop.xlane.xlu1 %1038 }
 0x3d6   : > { %1611 = vrcp.f32 %v1039_v61  ;;  %v1033_v62 = vpop.xlane.xlu0 %1032 }
 0x3d7   : > { %1613 = vrcp.f32 %v1033_v62 }
 0x3da   : > { %v1037_v60 = vpop.xlane.xlu0 %1036 }
 0x3db   : > { %1615 = vrcp.f32 %v1037_v60 }
 0x3dc   : > { %v1610_v0 = vpop.eup %1609 }
 0x3dd   : > { %v1067_v1 = vmul.f32 %v1610_v0, %v2093_v14  ;;  %v1043_v4 = vpop.xlane.xlu1 %1042 }
 0x3de   : > { %1617 = vrcp.f32 %v1043_v4  ;;  %v1041_v5 = vpop.xlane.xlu0 %1040 }
 0x3df   : > { %1097 = vst [vmem:[%s2154_s15 + $0x8] sm:$0xff] %v1067_v1  ;;  %1619 = vrcp.f32 %v1041_v5 }
 0x3e0   : > { %v1612_v6 = vpop.eup %1611 }
 0x3e1   : > { %v1614_v63 = vpop.eup %1613  ;;  %v1071_v3 = vmul.f32 %v1612_v6, %v2098_v21  ;;  %v1047_v7 = vpop.xlane.xlu1 %1046 }
 0x3e2   : > { %v1065_v8 = vmul.f32 %v1614_v63, %v2100_v23  ;;  %1621 = vrcp.f32 %v1047_v7  ;;  %v1045_v9 = vpop.xlane.xlu0 %1044 }
 0x3e3   : > { %1099 = vst [vmem:[%s2154_s15 + $0x18] sm:$0xff] %v1071_v3  ;;  %1623 = vrcp.f32 %v1045_v9 }
 0x3e4   : > { %1096 = vst [vmem:[%s2154_s15] sm:$0xff] %v1065_v8 }
 0x3e5   : > { %v1616_v10 = vpop.eup %1615  ;;  %v1051_v11 = vpop.xlane.xlu1 %1050 }
 0x3e6   : > { %v1069_v2 = vmul.f32 %v1616_v10, %v2106_v29  ;;  %1625 = vrcp.f32 %v1051_v11  ;;  %v1049_v12 = vpop.xlane.xlu0 %1048 }
 0x3e7   : > { %1627 = vrcp.f32 %v1049_v12 }
 0x3e8   : > { %v1618_v13 = vpop.eup %1617  ;;  %1098 = vst [vmem:[%s2154_s15 + $0x10] sm:$0xff] %v1069_v2 }
 0x3e9   : > { %v1620_v14 = vpop.eup %1619  ;;  %v1075_v15 = vmul.f32 %v1618_v13, %v2111_v36  ;;  %v1055_v16 = vpop.xlane.xlu1 %1054 }
 0x3ea   : > { %v1073_v17 = vmul.f32 %v1620_v14, %v2113_v38  ;;  %1629 = vrcp.f32 %v1055_v16  ;;  %v1053_v18 = vpop.xlane.xlu0 %1052 }
 0x3eb   : > { %1101 = vst [vmem:[%s2154_s15 + $0x28] sm:$0xff] %v1075_v15  ;;  %1631 = vrcp.f32 %v1053_v18 }
 0x3ec   : > { %v1622_v19 = vpop.eup %1621  ;;  %1100 = vst [vmem:[%s2154_s15 + $0x20] sm:$0xff] %v1073_v17 }
 0x3ed   : > { %v1624_v20 = vpop.eup %1623  ;;  %v1079_v21 = vmul.f32 %v1622_v19, %v2119_v44  ;;  %v1059_v22 = vpop.xlane.xlu1 %1058 }
 0x3ee   : > { %v1077_v23 = vmul.f32 %v1624_v20, %v2121_v46  ;;  %1633 = vrcp.f32 %v1059_v22  ;;  %v1057_v24 = vpop.xlane.xlu0 %1056 }
 0x3ef   : > { %1103 = vst [vmem:[%s2154_s15 + $0x38] sm:$0xff] %v1079_v21  ;;  %1635 = vrcp.f32 %v1057_v24 }
 0x3f0   : > { %v1626_v25 = vpop.eup %1625  ;;  %1102 = vst [vmem:[%s2154_s15 + $0x30] sm:$0xff] %v1077_v23 }
 0x3f1   : > { %v1628_v26 = vpop.eup %1627  ;;  %v1083_v27 = vmul.f32 %v1626_v25, %v2126_v50  ;;  %v1063_v28 = vpop.xlane.xlu1 %1062 }
 0x3f2   : > { %v1081_v29 = vmul.f32 %v1628_v26, %v2128_v52  ;;  %1637 = vrcp.f32 %v1063_v28  ;;  %v1061_v30 = vpop.xlane.xlu0 %1060 }
 0x3f3   : > { %1105 = vst [vmem:[%s2154_s15 + $0x48] sm:$0xff] %v1083_v27  ;;  %1639 = vrcp.f32 %v1061_v30 }
 0x3f4   : > { %v1630_v31 = vpop.eup %1629  ;;  %1104 = vst [vmem:[%s2154_s15 + $0x40] sm:$0xff] %v1081_v29 }
 0x3f5   : > { %v1632_v32 = vpop.eup %1631  ;;  %v1087_v33 = vmul.f32 %v1630_v31, %v2132_v53 }
 0x3f6   : > { %v1085_v34 = vmul.f32 %v1632_v32, %v2134_v54 }
 0x3f7   : > { %1107 = vst [vmem:[%s2154_s15 + $0x58] sm:$0xff] %v1087_v33 }
 0x3f8   : > { %v1634_v35 = vpop.eup %1633  ;;  %1106 = vst [vmem:[%s2154_s15 + $0x50] sm:$0xff] %v1085_v34 }
 0x3f9   : > { %v1636_v36 = vpop.eup %1635  ;;  %v1091_v37 = vmul.f32 %v1634_v35, %v2138_v55 }
 0x3fa   : > { %v1089_v38 = vmul.f32 %v1636_v36, %v2140_v56 }
 0x3fb   : > { %1109 = vst [vmem:[%s2154_s15 + $0x68] sm:$0xff] %v1091_v37 }
 0x3fc   : > { %v1638_v39 = vpop.eup %1637  ;;  %1108 = vst [vmem:[%s2154_s15 + $0x60] sm:$0xff] %v1089_v38 }
 0x3fd   : > { %v1640_v40 = vpop.eup %1639  ;;  %v1095_v41 = vmul.f32 %v1638_v39, %v2144_v57 }
 0x3fe   : > { %v1093_v42 = vmul.f32 %v1640_v40, %v2146_v58 }
 0x3ff   : > { %1111 = vst [vmem:[%s2154_s15 + $0x78] sm:$0xff] %v1095_v41 }
 0x400   : > { %1110 = vst [vmem:[%s2154_s15 + $0x70] sm:$0xff] %v1093_v42 }
 0x401   : > { %1654 = shalt.err (!%p1651_p3)
}
 0x402   : > { %s1655_s9 = scalar_lea.hbm %s2189_s20, 2048  ;;  %s1659_s14 = scalar_lea.hbm %s2246_s7, 4096 }
 0x403   : > { %p1656_p4 = scmp.ne.s32.totalorder %s2189_s20, %s1655_s9  ;;  %p1660_p9 = scmp.lt.u32.totalorder %s2189_s20, %s2246_s7 }
 0x404   : > { %p1661_p10 = scmp.lt.u32.totalorder %s1659_s14, %s1655_s9  ;;  %p1663_p12 = scmp.lt.u32.totalorder %s1655_s9, %s2189_s20 }
 0x405   : > { %p1657_p7 = pnand %p1656_p4, %p1786_p5 }
 0x406   : > { %p1662_p11 = por %p1661_p10, %p1660_p9 }
 0x407   : > { %p1658_p8 = pneg %p1657_p7 }
 0x408   : > { %p1664_p13 = por %p1663_p12, %p1662_p11 }
 0x40a   : > { %p1665_p0 = pnand %p1664_p13, %p1658_p8 }
 0x40c   : > { %1668 = shalt.err (!%p1665_p0)
}
 0x40d   : > { %s1706_s17 = smov 128   ;;  %s1707_s18 = smov 8  }
 0x40e   : > { %1536 = dma.vmem_to_hbm [thread:$0]  (%p1786_p5), %s2191_s29, 2048, %s2189_s20, %s2198_s28, %s1706_s17, %s1706_s17, %s1707_s18  }
 0x40f PF: > { %p1542_p1 = scmp.ge.s32.totalorder %s1703_s27, 2  ;;  %s1141_s21 = sand.u32 1, %s1691_s24  }
 0x410   : > { %s1142_s22 = scalar_lea.sflag [#allocation3], %s1141_s21 }
 0x411   : > { %p1539_p2 = pnand %p1542_p1, %p1790_p6 }
 0x413   : > { %1686 = dma.done.wait (!%p1539_p2), %s1142_s22, 2048  }
 0x414   : > { %1688 = vsyncadd (!%p1539_p2), %s1142_s22, 4294965248  ;;  %p17_p3 = scmp.ge.s32.totalorder %s1773_s30, 4   ;;  %s2249_s24 = smov %s1695_s25 }
 0x415   : > { %s2250_s25 = smov %s1699_s26  ;;  %s2251_s26 = smov %s1784_s10 }
 0x416   : > { %s2252_s27 = smov %s1773_s30  ;;  %19 = sbr.rel (!%p17_p3) target bundleno = 3 (0x3), region = 83 }
 0x41d   :  { %1147 = vsyncpa [#allocation3], 1 }
 0x41e   :  { %1149 = vsyncpa [#allocation3 + $0x1], 1 }

</bundles_post_ra>
